<compile_context>
chip_gen: v5e
topology: v5e:2x2
jax: 0.10.0
libtpu: 0.0.40
codegen_flags: <defaults>
</compile_context>

<pallas_src>
import functools

import jax
import jax.numpy as jnp
from jax.experimental import pallas as pl
from jax.experimental.pallas import tpu as pltpu


_NEG_SLOPE = 0.01  # torch.nn.LeakyReLU default negative_slope


def _leaky_relu(x):
    # max(x, a*x) == LeakyReLU(x) exactly for 0 < a < 1 (mul+max: 2 VALU ops).
    return jnp.maximum(x, _NEG_SLOPE * x)


def _round_up(a, m):
    return (a + m - 1) // m * m


def _wnet_kernel(x_ref, w1_ref, b1_ref, w2_ref, b2_ref, w3_ref, b3_ref, o_ref,
                 *, abs_output, layer1_on_vpu, layer3_on_vpu):
    """One batch tile (tb rows) of the whole 3-layer MLP, fused in VMEM.

    Natural layout (batch on sublanes, features on lanes) -> no input relayout.
      x_ref : (tb, S)  f32
      w1_ref: (S, H)            b1_ref: (1, H)
      w2_ref: (H, 2H)           b2_ref: (1, 2H)
      w3_ref: (1, 2H) [VPU path] or (2H, O) [MXU path]
      b3_ref: (1, O)            o_ref : (tb, O)
    """
    x = x_ref[...]  # f32

    # ---- layer 1 ---------------------------------------------------------
    if layer1_on_vpu:
        # K = S is tiny: S broadcast-FMAs on the VPU instead of a near-empty MXU
        # pass; keeps the MXU free for layer 2. Done fully in f32.
        w1 = w1_ref[...]
        h1 = x[:, 0:1] * w1[0:1, :]
        for k in range(1, x.shape[1]):
            h1 = h1 + x[:, k:k + 1] * w1[k:k + 1, :]
        h1 = h1 + b1_ref[...]
    else:
        h1 = jnp.dot(x.astype(w1_ref.dtype), w1_ref[...],
                     preferred_element_type=jnp.float32) + b1_ref[...]
    h1 = _leaky_relu(h1)

    # ---- layer 2 (MXU; bf16 operands by default, f32 accumulation) --------
    h2 = jnp.dot(h1.astype(w2_ref.dtype), w2_ref[...],
                 preferred_element_type=jnp.float32) + b2_ref[...]
    h2 = _leaky_relu(h2)

    # ---- layer 3 -----------------------------------------------------------
    if layer3_on_vpu:
        # out_dim == 1: VPU multiply + XLU lane-reduce instead of an M=1 matmul.
        out = jnp.sum(h2 * w3_ref[...], axis=1, keepdims=True) + b3_ref[...]
    else:
        out = jnp.dot(h2.astype(w3_ref.dtype), w3_ref[...],
                      preferred_element_type=jnp.float32) + b3_ref[...]

    if abs_output:
        # torch module applies torch.abs() on the positive_output path.
        out = jnp.abs(out)

    o_ref[...] = out.astype(o_ref.dtype)


def _vmem_cap_bytes():
    """Generation-aware scoped-VMEM cap (v7x: ~48 MiB of 64; v5e/v6e: ~96 of 128)."""
    cap = 64 << 20
    try:
        cap = int(pltpu.get_tpu_info().vmem_capacity_bytes)
    except Exception:
        pass
    if cap <= 0:
        cap = 64 << 20
    return min(int(0.75 * cap), 100 << 20)


def wnetwork_forward(s, params, *, square_output=False, batch_tile=4096,
                     compute_dtype=jnp.bfloat16):
    """Pallas-backed forward of WNetworkModel.

    s:      (B, state_dim) float32
    params: torch-layout dict — w1 (H,S), b1 (H,), w2 (2H,H), b2 (2H,), w3 (O,2H), b3 (O,)
    compute_dtype: MXU operand dtype (bf16 by default); accumulation, bias,
                   LeakyReLU and the VPU layers stay in float32.
    """
    w1, b1 = params["w1"], params["b1"]
    w2, b2 = params["w2"], params["b2"]
    w3, b3 = params["w3"], params["b3"]

    B, S = s.shape
    H, H2, O = w1.shape[0], w2.shape[0], w3.shape[0]
    cd = jnp.dtype(compute_dtype)

    layer1_on_vpu = S <= 8     # tiny K: VPU broadcast-FMAs
    layer3_on_vpu = O == 1     # M=1 matmul -> VPU mul + lane reduce

    # Operands: input stays in natural (B, S) layout and in f32 (layer 1/3 run f32).
    x = s.astype(jnp.float32)
    w1k = w1.T.astype(jnp.float32 if layer1_on_vpu else cd)   # (S, H)
    w2k = w2.T.astype(cd)                                     # (H, 2H)
    w3k = (w3.astype(jnp.float32) if layer3_on_vpu            # (1, 2H)
           else w3.T.astype(cd))                              # (2H, O)
    b1k = b1.reshape(1, H).astype(jnp.float32)
    b2k = b2.reshape(1, H2).astype(jnp.float32)
    b3k = b3.reshape(1, O).astype(jnp.float32)

    # ---- batch tiling: big tiles, >= 2 grid steps (v7x megacore), VMEM-aware ---
    def pad128(n):
        return _round_up(max(int(n), 1), 128)

    def vmem_need(tile):
        # minor dims are lane-padded to 128 in VMEM; x/out double-buffered.
        per_row_bytes = 4 * (2 * pad128(S) + 2 * pad128(O)
                             + 2 * pad128(H) + 2 * pad128(H2))
        resident = 8 * (S * H + H * H2 + H2 * O + H + H2 + O + 8)
        return tile * per_row_bytes + resident

    cap = _vmem_cap_bytes()
    tb = _round_up(max(int(batch_tile), 128), 128)
    Bp0 = _round_up(B, 128)
    if Bp0 <= 128:
        tb = Bp0
    else:
        tb = min(tb, _round_up((Bp0 + 1) // 2, 128))   # at least 2 grid steps
    while tb > 128 and 2 * vmem_need(tb) > cap:
        tb = _round_up(tb // 2, 128)
    Bp = _round_up(B, tb)
    grid = (Bp // tb,)
    vmem_limit = int(min(cap, max(32 << 20, 2 * vmem_need(tb))))

    if Bp != B:  # cheap contiguous batch pad; no transpose / relayout of the input
        x = jnp.pad(x, ((0, Bp - B), (0, 0)))

    kernel = functools.partial(_wnet_kernel,
                               abs_output=bool(square_output),
                               layer1_on_vpu=layer1_on_vpu,
                               layer3_on_vpu=layer3_on_vpu)

    out = pl.pallas_call(
        kernel,
        out_shape=jax.ShapeDtypeStruct((Bp, O), jnp.float32),
        grid_spec=pltpu.PrefetchScalarGridSpec(
            num_scalar_prefetch=0,
            grid=grid,
            in_specs=[
                pl.BlockSpec((tb, S), lambda i: (i, 0)),      # x tile (natural layout)
                pl.BlockSpec(w1k.shape, lambda i: (0, 0)),    # w1 (VMEM-resident)
                pl.BlockSpec((1, H), lambda i: (0, 0)),       # b1
                pl.BlockSpec((H, H2), lambda i: (0, 0)),      # w2
                pl.BlockSpec((1, H2), lambda i: (0, 0)),      # b2
                pl.BlockSpec(w3k.shape, lambda i: (0, 0)),    # w3
                pl.BlockSpec((1, O), lambda i: (0, 0)),       # b3
            ],
            out_specs=pl.BlockSpec((tb, O), lambda i: (i, 0)),
        ),
        compiler_params=pltpu.CompilerParams(
            dimension_semantics=("parallel",),  # batch tiles shard across v7x's 2 TCs
            vmem_limit_bytes=vmem_limit,
        ),
    )(x, w1k, b1k, w2k, b2k, w3k, b3k)

    return out[:B]


def init_params(key, state_dim, hidden_dim, out_dim=1):
    """torch.nn.Linear-style init (U[-1/sqrt(fan_in), 1/sqrt(fan_in)]), torch weight layout."""
    ks = jax.random.split(key, 6)

    def lin(kw, kb, fan_in, fan_out):
        bound = 1.0 / jnp.sqrt(float(fan_in))
        w = jax.random.uniform(kw, (fan_out, fan_in), jnp.float32, -bound, bound)
        b = jax.random.uniform(kb, (fan_out,), jnp.float32, -bound, bound)
        return w, b

    w1, b1 = lin(ks[0], ks[1], state_dim, hidden_dim)
    w2, b2 = lin(ks[2], ks[3], hidden_dim, hidden_dim * 2)
    w3, b3 = lin(ks[4], ks[5], hidden_dim * 2, out_dim)
    return {"w1": w1, "b1": b1, "w2": w2, "b2": b2, "w3": w3, "b3": b3}


def reference_forward(s, params, square_output=False):
    h1 = _leaky_relu(s @ params["w1"].T + params["b1"])
    h2 = _leaky_relu(h1 @ params["w2"].T + params["b2"])
    out = h2 @ params["w3"].T + params["b3"]
    return jnp.abs(out) if square_output else out


if __name__ == "__main__":
    key = jax.random.PRNGKey(0)
    k_param, k_x1, k_x2 = jax.random.split(key, 3)

    state_dim, hidden_dim, out_dim = 4, 32, 1
    params = init_params(k_param, state_dim, hidden_dim, out_dim)

    # Small batch (latency path: one 128-row tile after batch padding), f32 compute.
    s_small = jax.random.normal(k_x1, (8, state_dim), jnp.float32)
    out_f32 = jax.block_until_ready(
        wnetwork_forward(s_small, params, compute_dtype=jnp.float32))
    ref = reference_forward(s_small, params, False)
    assert out_f32.shape == (8, out_dim)
    assert jnp.allclose(out_f32, ref, atol=1e-5, rtol=1e-5)

    out_abs = jax.block_until_ready(
        wnetwork_forward(s_small, params, square_output=True,
                         compute_dtype=jnp.float32))
    assert jnp.allclose(out_abs, reference_forward(s_small, params, True),
                        atol=1e-5, rtol=1e-5)

    # Multi-tile grid (>=2 "parallel" batch steps for v7x) + non-multiple batch pad.
    s_big = jax.random.normal(k_x2, (384, state_dim), jnp.float32)
    ref_big = reference_forward(s_big, params, False)
    out_big_f32 = jax.block_until_ready(
        wnetwork_forward(s_big, params, compute_dtype=jnp.float32))
    assert out_big_f32.shape == (384, out_dim)
    assert jnp.allclose(out_big_f32, ref_big, atol=1e-5, rtol=1e-5)

    # Default path: bf16 MXU operands for layer 2 only (f32 accumulation/epilogue).
    out_big_bf16 = jax.block_until_ready(wnetwork_forward(s_big, params))
    assert float(jnp.max(jnp.abs(out_big_bf16 - ref_big))) < 5e-2

    print("KERNEL_OK")
</pallas_src>

<mosaic_0001>
module attributes {stable_mosaic.version = 11 : i64} {
  func.func @_wnet_kernel(%arg0: i32, %arg1: memref<128x4xf32, #tpu.memory_space<vmem>>, %arg2: memref<4x32xf32, #tpu.memory_space<vmem>>, %arg3: memref<1x32xf32, #tpu.memory_space<vmem>>, %arg4: memref<32x64xf32, #tpu.memory_space<vmem>>, %arg5: memref<1x64xf32, #tpu.memory_space<vmem>>, %arg6: memref<1x64xf32, #tpu.memory_space<vmem>>, %arg7: memref<1x1xf32, #tpu.memory_space<vmem>>, %arg8: memref<128x1xf32, #tpu.memory_space<vmem>>) attributes {dimension_semantics = [#tpu.dimension_semantics<parallel>], iteration_bounds = array<i64: 1>, scalar_prefetch = 0 : i64, scratch_operands = 0 : i64, tpu.core_type = #tpu.core_type<tc>, window_params = [{transform_indices = @transform_0, window_bounds = array<i64: 128, 4>}, {pipeline_mode = #tpu.pipeline_mode<synchronous>, transform_indices = @transform_1, window_bounds = array<i64: 4, 32>}, {pipeline_mode = #tpu.pipeline_mode<synchronous>, transform_indices = @transform_2, window_bounds = array<i64: 1, 32>}, {pipeline_mode = #tpu.pipeline_mode<synchronous>, transform_indices = @transform_3, window_bounds = array<i64: 32, 64>}, {pipeline_mode = #tpu.pipeline_mode<synchronous>, transform_indices = @transform_4, window_bounds = array<i64: 1, 64>}, {pipeline_mode = #tpu.pipeline_mode<synchronous>, transform_indices = @transform_5, window_bounds = array<i64: 1, 64>}, {pipeline_mode = #tpu.pipeline_mode<synchronous>, transform_indices = @transform_6, window_bounds = array<i64: 1, 1>}, {transform_indices = @transform_7, window_bounds = array<i64: 128, 1>}]} {
    %c0 = arith.constant 0 : index
    %c0_0 = arith.constant 0 : index
    %0 = vector.load %arg1[%c0, %c0_0] : memref<128x4xf32, #tpu.memory_space<vmem>>, vector<128x4xf32>
    %c0_1 = arith.constant 0 : index
    %c0_2 = arith.constant 0 : index
    %1 = vector.load %arg2[%c0_1, %c0_2] : memref<4x32xf32, #tpu.memory_space<vmem>>, vector<4x32xf32>
    %2 = vector.extract_strided_slice %0 {offsets = [0, 0], sizes = [128, 1], strides = [1, 1]} : vector<128x4xf32> to vector<128x1xf32>
    %3 = vector.extract_strided_slice %1 {offsets = [0, 0], sizes = [1, 32], strides = [1, 1]} : vector<4x32xf32> to vector<1x32xf32>
    %4 = vector.broadcast %2 : vector<128x1xf32> to vector<128x32xf32>
    %5 = vector.broadcast %3 : vector<1x32xf32> to vector<128x32xf32>
    %6 = arith.mulf %4, %5 : vector<128x32xf32>
    %7 = vector.extract_strided_slice %0 {offsets = [0, 1], sizes = [128, 1], strides = [1, 1]} : vector<128x4xf32> to vector<128x1xf32>
    %8 = vector.extract_strided_slice %1 {offsets = [1, 0], sizes = [1, 32], strides = [1, 1]} : vector<4x32xf32> to vector<1x32xf32>
    %9 = vector.broadcast %7 : vector<128x1xf32> to vector<128x32xf32>
    %10 = vector.broadcast %8 : vector<1x32xf32> to vector<128x32xf32>
    %11 = arith.mulf %9, %10 : vector<128x32xf32>
    %12 = arith.addf %6, %11 : vector<128x32xf32>
    %13 = vector.extract_strided_slice %0 {offsets = [0, 2], sizes = [128, 1], strides = [1, 1]} : vector<128x4xf32> to vector<128x1xf32>
    %14 = vector.extract_strided_slice %1 {offsets = [2, 0], sizes = [1, 32], strides = [1, 1]} : vector<4x32xf32> to vector<1x32xf32>
    %15 = vector.broadcast %13 : vector<128x1xf32> to vector<128x32xf32>
    %16 = vector.broadcast %14 : vector<1x32xf32> to vector<128x32xf32>
    %17 = arith.mulf %15, %16 : vector<128x32xf32>
    %18 = arith.addf %12, %17 : vector<128x32xf32>
    %19 = vector.extract_strided_slice %0 {offsets = [0, 3], sizes = [128, 1], strides = [1, 1]} : vector<128x4xf32> to vector<128x1xf32>
    %20 = vector.extract_strided_slice %1 {offsets = [3, 0], sizes = [1, 32], strides = [1, 1]} : vector<4x32xf32> to vector<1x32xf32>
    %21 = vector.broadcast %19 : vector<128x1xf32> to vector<128x32xf32>
    %22 = vector.broadcast %20 : vector<1x32xf32> to vector<128x32xf32>
    %23 = arith.mulf %21, %22 : vector<128x32xf32>
    %24 = arith.addf %18, %23 : vector<128x32xf32>
    %c0_3 = arith.constant 0 : index
    %c0_4 = arith.constant 0 : index
    %25 = vector.load %arg3[%c0_3, %c0_4] : memref<1x32xf32, #tpu.memory_space<vmem>>, vector<1x32xf32>
    %26 = vector.broadcast %25 : vector<1x32xf32> to vector<128x32xf32>
    %27 = arith.addf %24, %26 : vector<128x32xf32>
    %cst = arith.constant 0.00999999977 : f32
    %28 = vector.broadcast %cst : f32 to vector<128x32xf32>
    %29 = arith.mulf %28, %27 : vector<128x32xf32>
    %30 = arith.maximumf %27, %29 : vector<128x32xf32>
    %c0_5 = arith.constant 0 : index
    %c0_6 = arith.constant 0 : index
    %31 = vector.load %arg4[%c0_5, %c0_6] : memref<32x64xf32, #tpu.memory_space<vmem>>, vector<32x64xf32>
    %cst_7 = arith.constant dense<0.000000e+00> : vector<128x64xf32>
    %32 = tpu.matmul %30, %31, %cst_7 {dimension_numbers = #tpu.dot_dimension_numbers<[1], [0], [0], [1], [0, 0, 1, 1], [], []>} : vector<128x32xf32>, vector<32x64xf32>, vector<128x64xf32> -> vector<128x64xf32>
    %c0_8 = arith.constant 0 : index
    %c0_9 = arith.constant 0 : index
    %33 = vector.load %arg5[%c0_8, %c0_9] : memref<1x64xf32, #tpu.memory_space<vmem>>, vector<1x64xf32>
    %34 = vector.broadcast %33 : vector<1x64xf32> to vector<128x64xf32>
    %35 = arith.addf %32, %34 : vector<128x64xf32>
    %cst_10 = arith.constant 0.00999999977 : f32
    %36 = vector.broadcast %cst_10 : f32 to vector<128x64xf32>
    %37 = arith.mulf %36, %35 : vector<128x64xf32>
    %38 = arith.maximumf %35, %37 : vector<128x64xf32>
    %c0_11 = arith.constant 0 : index
    %c0_12 = arith.constant 0 : index
    %39 = vector.load %arg6[%c0_11, %c0_12] : memref<1x64xf32, #tpu.memory_space<vmem>>, vector<1x64xf32>
    %40 = vector.broadcast %39 : vector<1x64xf32> to vector<128x64xf32>
    %41 = arith.mulf %38, %40 : vector<128x64xf32>
    %cst_13 = arith.constant dense<0.000000e+00> : vector<128xf32>
    %42 = vector.multi_reduction <add>, %41, %cst_13 [1] : vector<128x64xf32> to vector<128xf32>
    %43 = vector.shape_cast %42 : vector<128xf32> to vector<128x1xf32>
    %c0_14 = arith.constant 0 : index
    %c0_15 = arith.constant 0 : index
    %44 = vector.load %arg7[%c0_14, %c0_15] : memref<1x1xf32, #tpu.memory_space<vmem>>, vector<1x1xf32>
    %45 = vector.broadcast %44 : vector<1x1xf32> to vector<128x1xf32>
    %46 = arith.addf %43, %45 : vector<128x1xf32>
    %c0_16 = arith.constant 0 : index
    %c0_17 = arith.constant 0 : index
    %47 = vector.load %arg8[%c0_16, %c0_17] : memref<128x1xf32, #tpu.memory_space<vmem>>, vector<128x1xf32>
    tpu.vector_store %arg8[%c0_16, %c0_17], %46 {strides = array<i32>} : memref<128x1xf32, #tpu.memory_space<vmem>>, vector<128x1xf32>,
    return
  }
  func.func @transform_0(%arg0: i32) -> (i32, i32) {
    %c0_i32 = arith.constant 0 : i32
    %c0_i32_0 = arith.constant 0 : i32
    return %arg0, %c0_i32 : i32, i32
  }
  func.func @transform_1(%arg0: i32) -> (i32, i32) {
    %c0_i32 = arith.constant 0 : i32
    %c0_i32_0 = arith.constant 0 : i32
    %c0_i32_1 = arith.constant 0 : i32
    return %c0_i32, %c0_i32_0 : i32, i32
  }
  func.func @transform_2(%arg0: i32) -> (i32, i32) {
    %c0_i32 = arith.constant 0 : i32
    %c0_i32_0 = arith.constant 0 : i32
    %c0_i32_1 = arith.constant 0 : i32
    return %c0_i32, %c0_i32_0 : i32, i32
  }
  func.func @transform_3(%arg0: i32) -> (i32, i32) {
    %c0_i32 = arith.constant 0 : i32
    %c0_i32_0 = arith.constant 0 : i32
    %c0_i32_1 = arith.constant 0 : i32
    return %c0_i32, %c0_i32_0 : i32, i32
  }
  func.func @transform_4(%arg0: i32) -> (i32, i32) {
    %c0_i32 = arith.constant 0 : i32
    %c0_i32_0 = arith.constant 0 : i32
    %c0_i32_1 = arith.constant 0 : i32
    return %c0_i32, %c0_i32_0 : i32, i32
  }
  func.func @transform_5(%arg0: i32) -> (i32, i32) {
    %c0_i32 = arith.constant 0 : i32
    %c0_i32_0 = arith.constant 0 : i32
    %c0_i32_1 = arith.constant 0 : i32
    return %c0_i32, %c0_i32_0 : i32, i32
  }
  func.func @transform_6(%arg0: i32) -> (i32, i32) {
    %c0_i32 = arith.constant 0 : i32
    %c0_i32_0 = arith.constant 0 : i32
    %c0_i32_1 = arith.constant 0 : i32
    return %c0_i32, %c0_i32_0 : i32, i32
  }
  func.func @transform_7(%arg0: i32) -> (i32, i32) {
    %c0_i32 = arith.constant 0 : i32
    %c0_i32_0 = arith.constant 0 : i32
    return %arg0, %c0_i32 : i32, i32
  }
}

</mosaic_0001>

<bundles_post_ra>
// kernel: tpu_custom_call.1
= control target key start
LH: loop header
LB: loop body
LE: loop exit
PB: predicated region body
PF: predicated region fallthrough
CT: control target
= control target key end

     0   :  { %v811_v0 = vmov 0   ;;  %v812_v17 = vmov 1   ;;  %v813_v18 = vmov 2   ;;  %v814_v19 = vmov 3   ;;  %s1331_s0 = inlined_call_operand.vmem [shape: f32[128,4], index: 0, kind: input, shape index: {}]   ;;  %s1332_s2 = inlined_call_operand.vmem [shape: f32[1,32], index: 2, kind: input, shape index: {}]   ;;  %s1333_s1 = inlined_call_operand.vmem [shape: f32[4,32], index: 1, kind: input, shape index: {}]   ;;  %s1334_s3 = inlined_call_operand.vmem [shape: f32[32,64], index: 3, kind: input, shape index: {}]   ;;  %s1335_s4 = inlined_call_operand.vmem [shape: f32[1,64], index: 4, kind: input, shape index: {}]   ;;  %s1336_s5 = inlined_call_operand.vmem [shape: f32[1,64], index: 5, kind: input, shape index: {}]   ;;  %s1337_s6 = inlined_call_operand.<no memory space> [shape: f32[1,1], index: 6, kind: input, shape index: {}]   ;;  %s1338_s7 = inlined_call_operand.vmem [shape: f32[128,1], index: 7, kind: output, shape index: {}]  }
   0x1   :  { %783 = vset.pattern.permute.xlu2 %v811_v0  ;;  %782 = vset.pattern.permute.xlu1 %v811_v0  ;;  %v858_v1 = vld [vmem:[%s1331_s0 + $0x20] sm:$0xff]  ;;  %v863_v2 = vld [vmem:[%s1331_s0 + $0x10] sm:$0xff]  ;;  %v876_v4 = vld [vmem:[%s1331_s0 + $0x28] sm:$0xff]  ;;  %vm493_vm0 = vcmask 261120   ;;  %vm659_vm1 = vcmask 523264   ;;  %vm728_vm2 = vcmask 7168  }
   0x2   :  { %v868_v3 = vld [vmem:[%s1331_s0] sm:$0xff]  ;;  %781 = vset.pattern.permute.xlu0 %v811_v0  ;;  %67 = vperm.xlu2 %783, %v858_v1   ;;  %v881_v5 = vld [vmem:[%s1331_s0 + $0x18] sm:$0xff]  ;;  %v886_v6 = vld [vmem:[%s1331_s0 + $0x8] sm:$0xff] }
   0x3   :  { %57 = vperm.xlu1 %782, %v863_v2   ;;  %47 = vperm.xlu0 %781, %v868_v3   ;;  %v36_v7 = vld [vmem:[%s1331_s0 + $0x40] sm:$0xff]  ;;  %v897_v8 = vld [vmem:[%s1331_s0 + $0x38] sm:$0xff]  ;;  %v902_v9 = vld [vmem:[%s1331_s0 + $0x30] sm:$0xff] }
   0x4   :  { %v909_v10 = vld [vmem:[%s1331_s0 + $0x58] sm:$0xff]  ;;  %v914_v11 = vld [vmem:[%s1331_s0 + $0x50] sm:$0xff]  ;;  %v37_v12 = vld [vmem:[%s1331_s0 + $0x48] sm:$0xff] }
   0x5   :  { %v924_v13 = vld [vmem:[%s1331_s0 + $0x70] sm:$0xff]  ;;  %v41_v14 = vld [vmem:[%s1331_s0 + $0x68] sm:$0xff]  ;;  %v40_v15 = vld [vmem:[%s1331_s0 + $0x60] sm:$0xff] }
   0x6   :  { %v936_v16 = vld [vmem:[%s1331_s0 + $0x78] sm:$0xff]  ;;  %v984_v29 = vld [vmem:[%s1333_s1] sm:$0xf]  ;;  %v487_v63 = vld [vmem:[%s1334_s3 + $0x10] sm:$0xff] }
   0x7   :  { %v991_v30 = vperm.slane %v984_v29, 0  ;;  %v997_v33 = vperm.slane %v984_v29, 1  ;;  %v488_v62 = vld [vmem:[%s1334_s3 + $0x18] sm:$0xff] }
   0x8   :  { %765 = vmatpush.msra.mxu1 %v488_v62  ;;  %766 = vmatpush.msra.mxu2 %v488_v62 }
   0x9   :  { %554 = vmatpush.msra.mxu0 %v488_v62  ;;  %767 = vmatpush.msra.mxu3 %v488_v62 }
   0xa   :  { %72 = vperm.xlu2 %783, %v876_v4   ;;  %768 = vmatpush.msra.mxu1 %v487_v63 }
   0xb   :  { %62 = vperm.xlu1 %782, %v881_v5   ;;  %52 = vperm.xlu0 %781, %v886_v6  }
   0xc   :  { %769 = vmatpush.msra.mxu2 %v487_v63  ;;  %555 = vmatpush.msra.mxu0 %v487_v63 }
   0xd   :  { %770 = vmatpush.msra.mxu3 %v487_v63 }
  0x12   :  { %87 = vperm.xlu2 %783, %v36_v7  }
  0x13   :  { %82 = vperm.xlu1 %782, %v897_v8   ;;  %77 = vperm.xlu0 %781, %v902_v9  }
  0x1a   :  { %102 = vperm.xlu2 %783, %v909_v10  }
  0x1b   :  { %97 = vperm.xlu1 %782, %v914_v11   ;;  %92 = vperm.xlu0 %781, %v37_v12  }
  0x22   :  { %117 = vperm.xlu2 %783, %v924_v13  }
  0x23   :  { %112 = vperm.xlu1 %782, %v41_v14   ;;  %107 = vperm.xlu0 %781, %v40_v15  }
  0x2a   :  { %785 = vset.pattern.permute.xlu2 %v812_v17 }
  0x2b   :  { %784 = vset.pattern.permute.xlu1 %v812_v17  ;;  %122 = vperm.xlu0 %781, %v936_v16  }
  0x2c   :  { %147 = vperm.xlu2 %785, %v886_v6   ;;  %143 = vperm.xlu1 %784, %v868_v3  }
  0x33   :  { %786 = vset.pattern.permute.xlu0 %v812_v17 }
  0x34   :  { %159 = vperm.xlu2 %785, %v858_v1   ;;  %155 = vperm.xlu1 %784, %v881_v5  }
  0x35   :  { %151 = vperm.xlu0 %786, %v863_v2  }
  0x3c   :  { %167 = vperm.xlu2 %785, %v902_v9   ;;  %163 = vperm.xlu1 %784, %v876_v4  }
  0x3d   :  { %171 = vperm.xlu0 %786, %v897_v8  }
  0x44   :  { %179 = vperm.xlu2 %785, %v37_v12   ;;  %175 = vperm.xlu1 %784, %v36_v7  }
  0x45   :  { %183 = vperm.xlu0 %786, %v914_v11  }
  0x4c   :  { %191 = vperm.xlu2 %785, %v40_v15   ;;  %187 = vperm.xlu1 %784, %v909_v10  }
  0x4d   :  { %195 = vperm.xlu0 %786, %v41_v14  }
  0x54   :  { %787 = vset.pattern.permute.xlu2 %v813_v18  ;;  %199 = vperm.xlu1 %784, %v924_v13  }
  0x55   :  { %793 = vset.pattern.permute.xlu0 %v814_v19  ;;  %272 = vperm.xlu2 %787, %v36_v7  }
  0x56   :  { %353 = vperm.xlu0 %793, %v858_v1  }
  0x5c   :  { %788 = vset.pattern.permute.xlu1 %v814_v19  ;;  %v957_v20 = vpop.permute.xlu2 %67 }
  0x5d   :  { %789 = vset.pattern.permute.xlu2 %v814_v19  ;;  %369 = vperm.xlu1 %788, %v36_v7   ;;  %v486_v7 = vld [vmem:[%s1334_s3 + $0x8] sm:$0xff] }
  0x5e   :  { %393 = vperm.xlu0 %793, %v924_v13   ;;  %385 = vperm.xlu2 %789, %v40_v15  }
  0x5f   :  { %771 = vmatpush.msra.mxu1 %v486_v7  ;;  %772 = vmatpush.msra.mxu2 %v486_v7 }
  0x60   :  { %556 = vmatpush.msra.mxu0 %v486_v7  ;;  %773 = vmatpush.msra.mxu3 %v486_v7 }
  0x64   :  { %v961_v21 = vpop.permute.xlu2 %72 }
  0x65   :  { %790 = vset.pattern.permute.xlu1 %v813_v18 }
  0x66   :  { %799 = vset.pattern.permute.xlu0 %v813_v18  ;;  %791 = vset.pattern.permute.xlu2 %v813_v18 }
  0x67   :  { %240 = vperm.xlu1 %790, %v868_v3   ;;  %288 = vperm.xlu0 %799, %v40_v15  }
  0x68   :  { %256 = vperm.xlu2 %791, %v858_v1   ;;  %v131_v1 = vmul.f32 %v991_v30, %v961_v21 }
  0x6c   :  { %v968_v22 = vpop.permute.xlu2 %87 }
  0x6f   :  { %292 = vperm.xlu1 %790, %v41_v14   ;;  %276 = vperm.xlu0 %799, %v37_v12  }
  0x70   :  { %792 = vset.pattern.permute.xlu2 %v814_v19 }
  0x71   :  { %337 = vperm.xlu2 %792, %v868_v3  }
  0x74   :  { %v972_v23 = vpop.permute.xlu2 %102 }
  0x75   :  { %v58_v24 = vpop.permute.xlu1 %57  ;;  %v974_v25 = vpop.permute.xlu0 %47  ;;  %v137_v21 = vmul.f32 %v991_v30, %v972_v23 }
  0x76   :  { %v128_v58 = vmul.f32 %v991_v30, %v58_v24  ;;  %v126_v62 = vmul.f32 %v991_v30, %v974_v25 }
  0x77   :  { %794 = vset.pattern.permute.xlu1 %v814_v19  ;;  %280 = vperm.xlu0 %799, %v914_v11  }
  0x78   :  { %373 = vperm.xlu1 %794, %v37_v12   ;;  %v485_v12 = vld [vmem:[%s1334_s3] sm:$0xff] }
  0x79   :  { %389 = vperm.xlu2 %792, %v41_v14   ;;  %774 = vmatpush.msra.mxu1 %v485_v12 }
  0x7a   :  { %775 = vmatpush.msra.mxu2 %v485_v12  ;;  %557 = vmatpush.msra.mxu0 %v485_v12 }
  0x7b   :  { %776 = vmatpush.msra.mxu3 %v485_v12 }
  0x7c   :  { %v978_v26 = vpop.permute.xlu2 %117 }
  0x7d   :  { %v63_v27 = vpop.permute.xlu1 %62  ;;  %v53_v28 = vpop.permute.xlu0 %52 }
  0x7e   :  { %v127_v31 = vmul.f32 %v991_v30, %v53_v28  ;;  %v129_v54 = vmul.f32 %v991_v30, %v63_v27 }
  0x7f   :  { %300 = vperm.xlu0 %799, %v936_v16  }
  0x80   :  { %795 = vset.pattern.permute.xlu1 %v813_v18 }
  0x81   :  { %796 = vset.pattern.permute.xlu2 %v813_v18  ;;  %244 = vperm.xlu1 %795, %v886_v6  }
  0x82   :  { %260 = vperm.xlu2 %796, %v876_v4  }
  0x85   :  { %v994_v32 = vpop.permute.xlu1 %82  ;;  %v78_v34 = vpop.permute.xlu0 %77 }
  0x86   :  { %v148_v35 = vpop.permute.xlu2 %147  ;;  %v132_v41 = vmul.f32 %v991_v30, %v78_v34 }
  0x87   :  { %v208_v36 = vmul.f32 %v997_v33, %v148_v35  ;;  %252 = vperm.xlu0 %799, %v881_v5  }
  0x89   :  { %v1001_v37 = vadd.f32 %v208_v36, %v127_v31  ;;  %296 = vperm.xlu1 %795, %v924_v13   ;;  %v1089_v31 = vperm.slane %v984_v29, 2 }
  0x8a   :  { %797 = vset.pattern.permute.xlu2 %v814_v19 }
  0x8b   :  { %341 = vperm.xlu2 %797, %v886_v6  }
  0x8d   :  { %v1006_v38 = vpop.permute.xlu1 %97  ;;  %v93_v39 = vpop.permute.xlu0 %92 }
  0x8e   :  { %v1008_v40 = vpop.permute.xlu2 %159  ;;  %v135_v47 = vmul.f32 %v991_v30, %v93_v39  ;;  %v1103_v39 = vld [vmem:[%s1332_s2] ss:$0 sm:$0xff] }
  0x8f   :  { %806 = vset.pattern.permute.xlu0 %v814_v19  ;;  %v211_v28 = vmul.f32 %v997_v33, %v1008_v40 }
  0x90   :  { %365 = vperm.xlu0 %806, %v897_v8  }
  0x91   :  { %798 = vset.pattern.permute.xlu1 %v814_v19 }
  0x92   :  { %357 = vperm.xlu1 %798, %v876_v4  }
  0x93   :  { %377 = vperm.xlu2 %797, %v914_v11  }
  0x95   :  { %v1016_v42 = vpop.permute.xlu1 %112  ;;  %v1018_v43 = vpop.permute.xlu0 %107 }
  0x96   :  { %v168_v44 = vpop.permute.xlu2 %167 }
  0x97   :  { %v213_v45 = vmul.f32 %v997_v33, %v168_v44 }
  0x99   :  { %v1021_v46 = vadd.f32 %v213_v45, %v132_v41 }
  0x9a   :  { %800 = vset.pattern.permute.xlu1 %v812_v17 }
  0x9b   :  { %801 = vset.pattern.permute.xlu2 %v813_v18  ;;  %203 = vperm.xlu1 %800, %v936_v16  }
  0x9c   :  { %248 = vperm.xlu2 %801, %v863_v2  }
  0x9d   :  { %v1028_v48 = vpop.permute.xlu0 %122 }
  0x9e   :  { %v180_v49 = vpop.permute.xlu2 %179  ;;  %v1030_v50 = vpop.permute.xlu1 %143 }
  0x9f   :  { %v216_v51 = vmul.f32 %v997_v33, %v180_v49  ;;  %v207_v63 = vmul.f32 %v997_v33, %v1030_v50 }
  0xa1   :  { %v1033_v52 = vadd.f32 %v216_v51, %v135_v47 }
  0xa3   :  { %802 = vset.pattern.permute.xlu1 %v813_v18 }
  0xa4   :  { %284 = vperm.xlu2 %801, %v909_v10   ;;  %264 = vperm.xlu1 %802, %v902_v9  }
  0xa6   :  { %v156_v53 = vpop.permute.xlu1 %155  ;;  %v1039_v55 = vpop.permute.xlu2 %191 }
  0xa7   :  { %v210_v56 = vmul.f32 %v997_v33, %v156_v53  ;;  %v152_v57 = vpop.permute.xlu0 %151 }
  0xa8   :  { %v209_v59 = vmul.f32 %v997_v33, %v152_v57 }
  0xa9   :  { %v1044_v60 = vadd.f32 %v210_v56, %v129_v54 }
  0xaa   :  { %v1046_v61 = vadd.f32 %v209_v59, %v128_v58 }
  0xac   :  { %804 = vset.pattern.permute.xlu2 %v814_v19  ;;  %803 = vset.pattern.permute.xlu1 %v814_v19 }
  0xad   :  { %361 = vperm.xlu2 %804, %v902_v9   ;;  %345 = vperm.xlu1 %803, %v863_v2   ;;  %v133_v2 = vmul.f32 %v991_v30, %v994_v32 }
  0xae   :  { %v164_v0 = vpop.permute.xlu1 %163 }
  0xaf   :  { %v212_v3 = vmul.f32 %v997_v33, %v164_v0  ;;  %v172_v4 = vpop.permute.xlu0 %171  ;;  %v273_v6 = vpop.permute.xlu2 %272  ;;  %v219_v0 = vmul.f32 %v997_v33, %v1039_v55 }
  0xb0   :  { %v214_v9 = vmul.f32 %v997_v33, %v172_v4  ;;  %v312_v44 = vmul.f32 %v1089_v31, %v273_v6  ;;  %v223_v6 = vadd.f32 %v207_v63, %v126_v62 }
  0xb1   :  { %v1067_v11 = vadd.f32 %v212_v3, %v131_v1  ;;  %v138_v3 = vmul.f32 %v991_v30, %v1018_v43 }
  0xb2   :  { %v1072_v13 = vadd.f32 %v214_v9, %v133_v2 }
  0xb3   :  { %v235_v9 = vadd.f32 %v219_v0, %v138_v3 }
  0xb5   :  { %397 = vperm.xlu2 %804, %v936_v16   ;;  %381 = vperm.xlu1 %803, %v909_v10  }
  0xb6   :  { %v176_v14 = vpop.permute.xlu1 %175 }
  0xb7   :  { %v1076_v15 = vpop.permute.xlu0 %183  ;;  %v215_v34 = vmul.f32 %v997_v33, %v176_v14 }
  0xb8   :  { %v386_v17 = vpop.permute.xlu2 %385 }
  0xbd   :  { %349 = vperm.xlu2 %804, %v881_v5   ;;  %805 = vset.pattern.permute.xlu1 %v813_v18  ;;  %v130_v5 = vmul.f32 %v991_v30, %v957_v20  ;;  %v134_v20 = vmul.f32 %v991_v30, %v968_v22 }
  0xbe   :  { %268 = vperm.xlu1 %805, %v897_v8   ;;  %v188_v19 = vpop.permute.xlu1 %187  ;;  %v1094_v8 = vperm.slane %v984_v29, 3 }
  0xbf   :  { %v218_v16 = vmul.f32 %v997_v33, %v188_v19  ;;  %v196_v24 = vpop.permute.xlu0 %195  ;;  %v227_v32 = vadd.f32 %v211_v28, %v130_v5  ;;  %v231_v45 = vadd.f32 %v215_v34, %v134_v20  ;;  %v139_v28 = vmul.f32 %v991_v30, %v1016_v42 }
  0xc0   :  { %v413_v50 = vmul.f32 %v1094_v8, %v386_v17  ;;  %v220_v43 = vmul.f32 %v997_v33, %v196_v24 }
  0xc1   :  { %v1084_v10 = vadd.f32 %v218_v16, %v137_v21  ;;  %v328_v53 = vadd.f32 %v312_v44, %v231_v45 }
  0xc2   :  { %v257_v27 = vpop.permute.xlu2 %256 }
  0xc3   :  { %v308_v18 = vmul.f32 %v1089_v31, %v257_v27 }
  0xc5   :  { %v324_v36 = vadd.f32 %v308_v18, %v227_v32 }
  0xc6   :  { %v1097_v23 = vpop.permute.xlu1 %199 }
  0xc8   :  { %v354_v35 = vpop.permute.xlu0 %353 }
  0xc9   :  { %v405_v40 = vmul.f32 %v1094_v8, %v354_v35  ;;  %v236_v35 = vadd.f32 %v220_v43, %v139_v28  ;;  %v140_v43 = vmul.f32 %v991_v30, %v978_v26 }
  0xcb   :  { %v421_v29 = vadd.f32 %v405_v40, %v324_v36  ;;  %v338_v41 = vpop.permute.xlu2 %337 }
  0xcc   :  { %v401_v12 = vmul.f32 %v1094_v8, %v338_v41 }
  0xcd   :  { %v441_v47 = vadd.f32 %v1103_v39, %v421_v29 }
  0xcf   :  { %v370_v49 = vpop.permute.xlu1 %369  ;;  %v457_v51 = vmul.f32 0.01, %v441_v47 }
  0xd0   :  { %v409_v54 = vmul.f32 %v1094_v8, %v370_v49  ;;  %v1111_v56 = vpop.permute.xlu0 %393 }
  0xd1   :  { %v473_v57 = vmax.f32 %v441_v47, %v457_v51  ;;  %v217_v47 = vmul.f32 %v997_v33, %v1076_v15 }
  0xd2   :  { %v425_v58 = vadd.f32 %v409_v54, %v328_v53  ;;  %v136_v53 = vmul.f32 %v991_v30, %v1006_v38 }
  0xd3   :  { %753 = vmatmul.msk.f32.vlgmr.msra.gmra.mxu1 %vm493_vm0, %v473_v57  ;;  %v390_v22 = vpop.permute.xlu2 %389 }
  0xd4   :  { %v445_v59 = vadd.f32 %v1103_v39, %v425_v58  ;;  %v414_v20 = vmul.f32 %v1094_v8, %v390_v22  ;;  %v233_v62 = vadd.f32 %v217_v47, %v136_v53 }
  0xd6   :  { %v461_v1 = vmul.f32 0.01, %v445_v59 }
  0xd8   :  { %v477_v4 = vmax.f32 %v445_v59, %v461_v1 }
  0xd9   :  { %v241_v7 = vpop.permute.xlu1 %240  ;;  %v289_v2 = vpop.permute.xlu0 %288 }
  0xda   :  { %v304_v14 = vmul.f32 %v1089_v31, %v241_v7  ;;  %v316_v25 = vmul.f32 %v1089_v31, %v289_v2  ;;  %757 = vmatmul.msk.f32.vlgmr.msra.gmra.mxu2 %vm493_vm0, %v477_v4 }
  0xdc   :  { %v320_v55 = vadd.f32 %v304_v14, %v223_v6  ;;  %v332_v19 = vadd.f32 %v316_v25, %v235_v9  ;;  %v1128_v21 = vpop.permute.xlu2 %260 }
  0xdd   :  { %v309_v26 = vmul.f32 %v1089_v31, %v1128_v21  ;;  %v141_v21 = vmul.f32 %v991_v30, %v1028_v48 }
  0xde   :  { %v417_v16 = vadd.f32 %v401_v12, %v320_v55  ;;  %v429_v27 = vadd.f32 %v413_v50, %v332_v19  ;;  %v221_v55 = vmul.f32 %v997_v33, %v1097_v23 }
  0xe0   :  { %v437_v5 = vadd.f32 %v1103_v39, %v417_v16  ;;  %v449_v18 = vadd.f32 %v1103_v39, %v429_v27 }
  0xe1   :  { %v293_v32 = vpop.permute.xlu1 %292  ;;  %v277_v34 = vpop.permute.xlu0 %276 }
  0xe2   :  { %v317_v17 = vmul.f32 %v1089_v31, %v293_v32  ;;  %v453_v36 = vmul.f32 0.01, %v437_v5  ;;  %v465_v40 = vmul.f32 0.01, %v449_v18  ;;  %v313_v42 = vmul.f32 %v1089_v31, %v277_v34 }
  0xe4   :  { %v333_v29 = vadd.f32 %v317_v17, %v236_v35  ;;  %v469_v24 = vmax.f32 %v437_v5, %v453_v36  ;;  %v481_v41 = vmax.f32 %v449_v18, %v465_v40  ;;  %v329_v22 = vadd.f32 %v313_v42, %v1033_v52 }
  0xe5   :  { %v342_v44 = vpop.permute.xlu2 %341  ;;  %v237_v5 = vadd.f32 %v221_v55, %v140_v43 }
  0xe6   :  { %v430_v45 = vadd.f32 %v414_v20, %v333_v29  ;;  %749 = vmatmul.msk.f32.vlgmr.msra.gmra.mxu0 %vm493_vm0, %v469_v24  ;;  %761 = vmatmul.msk.f32.vlgmr.msra.gmra.mxu3 %vm493_vm0, %v481_v41  ;;  %v402_v52 = vmul.f32 %v1094_v8, %v342_v44  ;;  %v325_v29 = vadd.f32 %v309_v26, %v1067_v11 }
  0xe8   :  { %v450_v49 = vadd.f32 %v1103_v39, %v430_v45 }
  0xe9   :  { %v281_v51 = vpop.permute.xlu0 %280 }
  0xea   :  { %v314_v54 = vmul.f32 %v1089_v31, %v281_v51  ;;  %v374_v57 = vpop.permute.xlu1 %373  ;;  %v466_v58 = vmul.f32 0.01, %v450_v49 }
  0xeb   :  { %v410_v59 = vmul.f32 %v1094_v8, %v374_v57 }
  0xec   :  { %v482_v63 = vmax.f32 %v450_v49, %v466_v58  ;;  %v330_v3 = vadd.f32 %v314_v54, %v233_v62 }
  0xed   :  { %v426_v0 = vadd.f32 %v410_v59, %v329_v22  ;;  %v378_v1 = vpop.permute.xlu2 %377 }
  0xee   :  { %v411_v15 = vmul.f32 %v1094_v8, %v378_v1  ;;  %762 = vmatmul.msk.f32.gmra.mxu3 %vm493_vm0, %v482_v63 }
  0xef   :  { %v446_v4 = vadd.f32 %v1103_v39, %v426_v0 }
  0xf0   :  { %v427_v38 = vadd.f32 %v411_v15, %v330_v3 }
  0xf1   :  { %v462_v6 = vmul.f32 0.01, %v446_v4  ;;  %v301_v53 = vpop.permute.xlu0 %300 }
  0xf2   :  { %v447_v7 = vadd.f32 %v1103_v39, %v427_v38  ;;  %v319_v11 = vmul.f32 %v1089_v31, %v301_v53 }
  0xf3   :  { %v245_v2 = vpop.permute.xlu1 %244  ;;  %v478_v9 = vmax.f32 %v446_v4, %v462_v6 }
  0xf4   :  { %v305_v12 = vmul.f32 %v1089_v31, %v245_v2  ;;  %v463_v50 = vmul.f32 0.01, %v447_v7 }
  0xf5   :  { %758 = vmatmul.msk.f32.gmra.mxu2 %vm493_vm0, %v478_v9 }
  0xf6   :  { %v321_v14 = vadd.f32 %v305_v12, %v1001_v37  ;;  %v249_v25 = vpop.permute.xlu2 %248  ;;  %v479_v28 = vmax.f32 %v447_v7, %v463_v50  ;;  %v415_v37 = vmul.f32 %v1094_v8, %v1111_v56 }
  0xf7   :  { %v306_v4 = vmul.f32 %v1089_v31, %v249_v25 }
  0xf8   :  { %v418_v19 = vadd.f32 %v402_v52, %v321_v14 }
  0xf9   :  { %v253_v3 = vpop.permute.xlu0 %252  ;;  %v322_v52 = vadd.f32 %v306_v4, %v1046_v61 }
  0xfa   :  { %v438_v16 = vadd.f32 %v1103_v39, %v418_v19  ;;  %v307_v7 = vmul.f32 %v1089_v31, %v253_v3 }
  0xfb   :  { %v297_v27 = vpop.permute.xlu1 %296 }
  0xfc   :  { %v318_v18 = vmul.f32 %v1089_v31, %v297_v27  ;;  %v454_v32 = vmul.f32 0.01, %v438_v16  ;;  %v323_v50 = vadd.f32 %v307_v7, %v1044_v60 }
  0xfd   :  { %759 = vmatmul.msk.f32.gmra.mxu2 %vm493_vm0, %v479_v28 }
  0xfe   :  { %v334_v34 = vadd.f32 %v318_v18, %v237_v5  ;;  %v285_v35 = vpop.permute.xlu2 %284  ;;  %v470_v23 = vmax.f32 %v438_v16, %v454_v32 }
  0xff   :  { %v315_v25 = vmul.f32 %v1089_v31, %v285_v35 }
 0x100   :  { %v431_v17 = vadd.f32 %v415_v37, %v334_v34  ;;  %750 = vmatmul.msk.f32.gmra.mxu0 %vm493_vm0, %v470_v23 }
 0x101   :  { %v331_v28 = vadd.f32 %v315_v25, %v1084_v10 }
 0x102   :  { %v451_v36 = vadd.f32 %v1103_v39, %v431_v17  ;;  %v366_v35 = vpop.permute.xlu0 %365 }
 0x103   :  { %v408_v10 = vmul.f32 %v1094_v8, %v366_v35 }
 0x104   :  { %v358_v40 = vpop.permute.xlu1 %357  ;;  %v467_v20 = vmul.f32 0.01, %v451_v36 }
 0x105   :  { %v406_v24 = vmul.f32 %v1094_v8, %v358_v40 }
 0x106   :  { %v483_v41 = vmax.f32 %v451_v36, %v467_v20 }
 0x107   :  { %v422_v44 = vadd.f32 %v406_v24, %v325_v29  ;;  %v362_v56 = vpop.permute.xlu2 %361 }
 0x108   :  { %763 = vmatmul.msk.f32.gmra.mxu3 %vm493_vm0, %v483_v41  ;;  %v407_v0 = vmul.f32 %v1094_v8, %v362_v56 }
 0x109   :  { %v442_v45 = vadd.f32 %v1103_v39, %v422_v44  ;;  %v1209_v44 = vld [vmem:[%s1335_s4] ss:$0 sm:$0xff] }
 0x10b   :  { %v458_v42 = vmul.f32 0.01, %v442_v45 }
 0x10d   :  { %v204_v47 = vpop.permute.xlu1 %203  ;;  %v474_v49 = vmax.f32 %v442_v45, %v458_v42 }
 0x10e   :  { %v222_v51 = vmul.f32 %v997_v33, %v204_v47 }
 0x10f   :  { %v398_v54 = vpop.permute.xlu2 %397  ;;  %754 = vmatmul.msk.f32.gmra.mxu1 %vm493_vm0, %v474_v49 }
 0x110   :  { %v238_v57 = vadd.f32 %v222_v51, %v141_v21  ;;  %v416_v58 = vmul.f32 %v1094_v8, %v398_v54 }
 0x112   :  { %v335_v22 = vadd.f32 %v319_v11, %v238_v57 }
 0x114   :  { %v432_v59 = vadd.f32 %v416_v58, %v335_v22 }
 0x116   :  { %v452_v62 = vadd.f32 %v1103_v39, %v432_v59  ;;  %v265_v63 = vpop.permute.xlu1 %264 }
 0x117   :  { %v310_v30 = vmul.f32 %v1089_v31, %v265_v63  ;;  %v350_v38 = vpop.permute.xlu2 %349 }
 0x118   :  { %v468_v48 = vmul.f32 0.01, %v452_v62  ;;  %v404_v12 = vmul.f32 %v1094_v8, %v350_v38 }
 0x119   :  { %v326_v33 = vadd.f32 %v310_v30, %v1021_v46 }
 0x11a   :  { %v484_v1 = vmax.f32 %v452_v62, %v468_v48  ;;  %v420_v19 = vadd.f32 %v404_v12, %v323_v50 }
 0x11b   :  { %v423_v15 = vadd.f32 %v407_v0, %v326_v33 }
 0x11c   :  { %764 = vmatmul.msk.f32.gmra.mxu3 %vm493_vm0, %v484_v1  ;;  %v440_v61 = vadd.f32 %v1103_v39, %v420_v19 }
 0x11d   :  { %v443_v6 = vadd.f32 %v1103_v39, %v423_v15 }
 0x11e   :  { %v456_v37 = vmul.f32 0.01, %v440_v61 }
 0x11f   :  { %v346_v2 = vpop.permute.xlu1 %345  ;;  %v459_v9 = vmul.f32 0.01, %v443_v6 }
 0x120   :  { %v403_v46 = vmul.f32 %v1094_v8, %v346_v2  ;;  %v472_v17 = vmax.f32 %v440_v61, %v456_v37 }
 0x121   :  { %v475_v14 = vmax.f32 %v443_v6, %v459_v9 }
 0x122   :  { %v419_v55 = vadd.f32 %v403_v46, %v322_v52 }
 0x123   :  { %755 = vmatmul.msk.f32.gmra.mxu1 %vm493_vm0, %v475_v14 }
 0x124   :  { %v439_v43 = vadd.f32 %v1103_v39, %v419_v55 }
 0x126   :  { %v455_v16 = vmul.f32 0.01, %v439_v43 }
 0x127   :  { %v382_v27 = vpop.permute.xlu1 %381 }
 0x128   :  { %v412_v5 = vmul.f32 %v1094_v8, %v382_v27  ;;  %v471_v18 = vmax.f32 %v439_v43, %v455_v16 }
 0x12a   :  { %v428_v32 = vadd.f32 %v412_v5, %v331_v28  ;;  %751 = vmatmul.msk.f32.gmra.mxu0 %vm493_vm0, %v471_v18 }
 0x12c   :  { %v448_v60 = vadd.f32 %v1103_v39, %v428_v32 }
 0x12e   :  { %v464_v34 = vmul.f32 0.01, %v448_v60 }
 0x130   :  { %v269_v23 = vpop.permute.xlu1 %268  ;;  %v480_v26 = vmax.f32 %v448_v60, %v464_v34 }
 0x131   :  { %v311_v36 = vmul.f32 %v1089_v31, %v269_v23 }
 0x132   :  { %752 = vmatmul.msk.f32.gmra.mxu0 %vm493_vm0, %v472_v17  ;;  %760 = vmatmul.msk.f32.gmra.mxu2 %vm493_vm0, %v480_v26 }
 0x133   :  { %v327_v40 = vadd.f32 %v311_v36, %v1072_v13  ;;  %v1215_v13 = vld [vmem:[%s1336_s5] ss:$0 sm:$0xff] }
 0x135   :  { %v424_v20 = vadd.f32 %v408_v10, %v327_v40 }
 0x137   :  { %v444_v29 = vadd.f32 %v1103_v39, %v424_v20 }
 0x139   :  { %v460_v24 = vmul.f32 0.01, %v444_v29 }
 0x13b   :  { %v476_v41 = vmax.f32 %v444_v29, %v460_v24 }
 0x13d   :  { %756 = vmatmul.msk.f32.gmra.mxu1 %vm493_vm0, %v476_v41 }
 0x150   :  { %v571_v45 = vpop.f32.mrf.mxu1 }
 0x151   :  { %v572_v47 = vadd.f32 %v1209_v44, %v571_v45 }
 0x153   :  { %v611_v54 = vmul.f32 0.01, %v572_v47 }
 0x155   :  { %v627_v22 = vmax.f32 %v572_v47, %v611_v54 }
 0x157   :  { %v647_v0 = vmul.f32 %v1215_v13, %v627_v22 }
 0x159   :  { %v672_v48 = vsel %vm659_vm1, %v647_v0, 0.0 }
 0x15d   :  { %v583_v31 = vpop.f32.mrf.mxu2 }
 0x15e   :  { %v584_v8 = vadd.f32 %v1209_v44, %v583_v31 }
 0x160   :  { %v615_v56 = vmul.f32 0.01, %v584_v8 }
 0x162   :  { %v631_v42 = vmax.f32 %v584_v8, %v615_v56  ;;  %v12_v56 = vstv %s1337_s6 }
 0x163   :  { %v559_v39 = vpop.f32.mrf.mxu0  ;;  %13 = vst [vmem:[#allocation2] sm:$0x1] %v12_v56 }
 0x164   :  { %v560_v49 = vadd.f32 %v1209_v44, %v559_v39  ;;  %v651_v21 = vmul.f32 %v1215_v13, %v631_v42 }
 0x166   :  { %v607_v51 = vmul.f32 0.01, %v560_v49  ;;  %v684_v53 = vsel %vm659_vm1, %v651_v21, 0.0 }
 0x167   :  { %685 = vadd.xlane.f32.xlu0 %v684_v53 }
 0x168   :  { %v623_v11 = vmax.f32 %v560_v49, %v607_v51 }
 0x169   :  { %v595_v57 = vpop.f32.mrf.mxu3 }
 0x16a   :  { %v643_v58 = vmul.f32 %v1215_v13, %v623_v11  ;;  %v596_v59 = vadd.f32 %v1209_v44, %v595_v57 }
 0x16c   :  { %v660_v62 = vsel %vm659_vm1, %v643_v58, 0.0  ;;  %v619_v63 = vmul.f32 0.01, %v596_v59 }
 0x16d   :  { %661 = vadd.xlane.f32.xlu1 %v660_v62 }
 0x16e   :  { %v635_v30 = vmax.f32 %v596_v59, %v619_v63 }
 0x170   :  { %v655_v1 = vmul.f32 %v1215_v13, %v635_v30 }
 0x171   :  { %v598_v43 = vpop.f32.mrf.mxu3 }
 0x172   :  { %v696_v4 = vsel %vm659_vm1, %v655_v1, 0.0  ;;  %v599_v30 = vadd.f32 %v1209_v44, %v598_v43 }
 0x175   :  { %673 = vadd.xlane.f32.xlu1 %v672_v48 }
 0x178   :  { %v586_v33 = vpop.f32.mrf.mxu2 }
 0x179   :  { %v587_v3 = vadd.f32 %v1209_v44, %v586_v33 }
 0x17b   :  { %v616_v15 = vmul.f32 0.01, %v587_v3 }
 0x17d   :  { %v632_v38 = vmax.f32 %v587_v3, %v616_v15  ;;  %v562_v6 = vpop.f32.mrf.mxu0  ;;  %697 = vadd.xlane.f32.xlu1 %v696_v4  ;;  %v620_v4 = vmul.f32 0.01, %v599_v30 }
 0x17e   :  { %v563_v7 = vadd.f32 %v1209_v44, %v562_v6 }
 0x17f   :  { %v652_v9 = vmul.f32 %v1215_v13, %v632_v38 }
 0x180   :  { %v608_v2 = vmul.f32 0.01, %v563_v7  ;;  %v589_v50 = vpop.f32.mrf.mxu2 }
 0x181   :  { %v687_v12 = vsel %vm659_vm1, %v652_v9, 0.0  ;;  %v590_v25 = vadd.f32 %v1209_v44, %v589_v50 }
 0x182   :  { %v624_v52 = vmax.f32 %v563_v7, %v608_v2  ;;  %v636_v2 = vmax.f32 %v599_v30, %v620_v4 }
 0x183   :  { %v617_v27 = vmul.f32 0.01, %v590_v25 }
 0x184   :  { %v644_v46 = vmul.f32 %v1215_v13, %v624_v52 }
 0x185   :  { %688 = vadd.xlane.f32.xlu1 %v687_v12  ;;  %v633_v5 = vmax.f32 %v590_v25, %v617_v27 }
 0x186   :  { %v663_v14 = vsel %vm659_vm1, %v644_v46, 0.0  ;;  %v810_v46 = vld [vmem:[#allocation2] ss:$0 sm:$0xff] }
 0x187   :  { %664 = vadd.xlane.f32.xlu2 %v663_v14  ;;  %v653_v60 = vmul.f32 %v1215_v13, %v633_v5 }
 0x189   :  { %v690_v37 = vsel %vm659_vm1, %v653_v60, 0.0 }
 0x18b   :  { %v601_v32 = vpop.f32.mrf.mxu3 }
 0x18c   :  { %v574_v55 = vpop.f32.mrf.mxu1  ;;  %v602_v11 = vadd.f32 %v1209_v44, %v601_v32 }
 0x18d   :  { %v575_v19 = vadd.f32 %v1209_v44, %v574_v55 }
 0x18e   :  { %v621_v62 = vmul.f32 0.01, %v602_v11 }
 0x18f   :  { %v612_v16 = vmul.f32 0.01, %v575_v19 }
 0x190   :  { %v637_v3 = vmax.f32 %v602_v11, %v621_v62 }
 0x191   :  { %v628_v28 = vmax.f32 %v575_v19, %v612_v16 }
 0x192   :  { %v657_v7 = vmul.f32 %v1215_v13, %v637_v3 }
 0x193   :  { %v648_v61 = vmul.f32 %v1215_v13, %v628_v28 }
 0x194   :  { %v702_v52 = vsel %vm659_vm1, %v657_v7, 0.0 }
 0x195   :  { %v675_v18 = vsel %vm659_vm1, %v648_v61, 0.0 }
 0x196   :  { %676 = vadd.xlane.f32.xlu2 %v675_v18 }
 0x19e   :  { %691 = vadd.xlane.f32.xlu2 %v690_v37 }
 0x19f   :  { %v604_v34 = vpop.f32.mrf.mxu3 }
 0x1a0   :  { %v577_v35 = vpop.f32.mrf.mxu1  ;;  %v605_v23 = vadd.f32 %v1209_v44, %v604_v34 }
 0x1a1   :  { %v578_v17 = vadd.f32 %v1209_v44, %v577_v35 }
 0x1a2   :  { %v622_v36 = vmul.f32 0.01, %v605_v23 }
 0x1a3   :  { %v613_v26 = vmul.f32 0.01, %v578_v17 }
 0x1a4   :  { %v638_v24 = vmax.f32 %v605_v23, %v622_v36 }
 0x1a5   :  { %v629_v10 = vmax.f32 %v578_v17, %v613_v26 }
 0x1a6   :  { %v658_v45 = vmul.f32 %v1215_v13, %v638_v24 }
 0x1a7   :  { %v565_v40 = vpop.f32.mrf.mxu0  ;;  %v649_v20 = vmul.f32 %v1215_v13, %v629_v10 }
 0x1a8   :  { %v566_v29 = vadd.f32 %v1209_v44, %v565_v40  ;;  %v705_v21 = vsel %vm659_vm1, %v658_v45, 0.0 }
 0x1a9   :  { %v678_v41 = vsel %vm659_vm1, %v649_v20, 0.0 }
 0x1aa   :  { %v609_v31 = vmul.f32 0.01, %v566_v29  ;;  %679 = vadd.xlane.f32.xlu1 %v678_v41 }
 0x1ac   :  { %v625_v8 = vmax.f32 %v566_v29, %v609_v31 }
 0x1ae   :  { %v645_v42 = vmul.f32 %v1215_v13, %v625_v8 }
 0x1af   :  { %v568_v39 = vpop.f32.mrf.mxu0 }
 0x1b0   :  { %v569_v47 = vadd.f32 %v1209_v44, %v568_v39  ;;  %v666_v49 = vsel %vm659_vm1, %v645_v42, 0.0 }
 0x1b1   :  { %667 = vadd.xlane.f32.xlu0 %v666_v49 }
 0x1b2   :  { %v610_v51 = vmul.f32 0.01, %v569_v47  ;;  %706 = vadd.xlane.f32.xlu1 %v705_v21 }
 0x1b4   :  { %v626_v53 = vmax.f32 %v569_v47, %v610_v51 }
 0x1b5   :  { %v592_v54 = vpop.f32.mrf.mxu2 }
 0x1b6   :  { %v593_v57 = vadd.f32 %v1209_v44, %v592_v54  ;;  %v646_v58 = vmul.f32 %v1215_v13, %v626_v53 }
 0x1b8   :  { %v618_v22 = vmul.f32 0.01, %v593_v57  ;;  %v669_v59 = vsel %vm659_vm1, %v646_v58, 0.0 }
 0x1b9   :  { %670 = vadd.xlane.f32.xlu2 %v669_v59 }
 0x1ba   :  { %v634_v63 = vmax.f32 %v593_v57, %v618_v22  ;;  %v580_v0 = vpop.f32.mrf.mxu1 }
 0x1bb   :  { %v581_v48 = vadd.f32 %v1209_v44, %v580_v0  ;;  %v656_v44 = vmul.f32 %v1215_v13, %v636_v2 }
 0x1bc   :  { %v654_v33 = vmul.f32 %v1215_v13, %v634_v63 }
 0x1bd   :  { %v614_v1 = vmul.f32 0.01, %v581_v48  ;;  %v699_v12 = vsel %vm659_vm1, %v656_v44, 0.0 }
 0x1be   :  { %v693_v15 = vsel %vm659_vm1, %v654_v33, 0.0 }
 0x1bf   :  { %v630_v38 = vmax.f32 %v581_v48, %v614_v1  ;;  %694 = vadd.xlane.f32.xlu0 %v693_v15 }
 0x1c1   :  { %v650_v6 = vmul.f32 %v1215_v13, %v630_v38 }
 0x1c3   :  { %v681_v9 = vsel %vm659_vm1, %v650_v6, 0.0 }
 0x1c4   :  { %682 = vadd.xlane.f32.xlu2 %v681_v9 }
 0x1c7   :  { %703 = vadd.xlane.f32.xlu0 %v702_v52 }
 0x1cc   :  { %700 = vadd.xlane.f32.xlu2 %v699_v12 }
 0x1da   :  { %v686_v14 = vpop.xlane.xlu0 %685 }
 0x1db   :  { %v720_v50 = vadd.f32 %v810_v46, %v686_v14 }
 0x1dd   :  { %737 = vst.msk [vmem:[%s1338_s7 + $0x40] sm:$0xff] %vm728_vm2, %v720_v50 }
 0x1e0   :  { %v662_v55 = vpop.xlane.xlu1 %661 }
 0x1e1   :  { %v712_v25 = vadd.f32 %v810_v46, %v662_v55 }
 0x1e3   :  { %729 = vst.msk [vmem:[%s1338_s7] sm:$0xff] %vm728_vm2, %v712_v25 }
 0x1e8   :  { %v674_v13 = vpop.xlane.xlu1 %673 }
 0x1e9   :  { %v716_v19 = vadd.f32 %v810_v46, %v674_v13 }
 0x1eb   :  { %733 = vst.msk [vmem:[%s1338_s7 + $0x20] sm:$0xff] %vm728_vm2, %v716_v19 }
 0x1f0   :  { %v698_v43 = vpop.xlane.xlu1 %697 }
 0x1f1   :  { %v724_v16 = vadd.f32 %v810_v46, %v698_v43 }
 0x1f3   :  { %741 = vst.msk [vmem:[%s1338_s7 + $0x60] sm:$0xff] %vm728_vm2, %v724_v16 }
 0x1f8   :  { %v689_v27 = vpop.xlane.xlu1 %688 }
 0x1f9   :  { %v721_v28 = vadd.f32 %v810_v46, %v689_v27 }
 0x1fa   :  { %v665_v61 = vpop.xlane.xlu2 %664 }
 0x1fb   :  { %738 = vst.msk [vmem:[%s1338_s7 + $0x48] sm:$0xff] %vm728_vm2, %v721_v28  ;;  %v713_v5 = vadd.f32 %v810_v46, %v665_v61 }
 0x1fd   :  { %730 = vst.msk [vmem:[%s1338_s7 + $0x8] sm:$0xff] %vm728_vm2, %v713_v5 }
 0x209   :  { %v677_v18 = vpop.xlane.xlu2 %676 }
 0x20a   :  { %v717_v32 = vadd.f32 %v810_v46, %v677_v18 }
 0x20c   :  { %734 = vst.msk [vmem:[%s1338_s7 + $0x28] sm:$0xff] %vm728_vm2, %v717_v32 }
 0x211   :  { %v692_v60 = vpop.xlane.xlu2 %691 }
 0x212   :  { %v722_v37 = vadd.f32 %v810_v46, %v692_v60 }
 0x214   :  { %739 = vst.msk [vmem:[%s1338_s7 + $0x50] sm:$0xff] %vm728_vm2, %v722_v37 }
 0x21d   :  { %v680_v34 = vpop.xlane.xlu1 %679 }
 0x21e   :  { %v718_v35 = vadd.f32 %v810_v46, %v680_v34 }
 0x220   :  { %735 = vst.msk [vmem:[%s1338_s7 + $0x30] sm:$0xff] %vm728_vm2, %v718_v35 }
 0x224   :  { %v668_v23 = vpop.xlane.xlu0 %667 }
 0x225   :  { %v714_v17 = vadd.f32 %v810_v46, %v668_v23  ;;  %v707_v26 = vpop.xlane.xlu1 %706 }
 0x226   :  { %v727_v36 = vadd.f32 %v810_v46, %v707_v26 }
 0x227   :  { %731 = vst.msk [vmem:[%s1338_s7 + $0x10] sm:$0xff] %vm728_vm2, %v714_v17 }
 0x228   :  { %744 = vst.msk [vmem:[%s1338_s7 + $0x78] sm:$0xff] %vm728_vm2, %v727_v36 }
 0x22c   :  { %v671_v10 = vpop.xlane.xlu2 %670 }
 0x22d   :  { %v715_v40 = vadd.f32 %v810_v46, %v671_v10 }
 0x22f   :  { %732 = vst.msk [vmem:[%s1338_s7 + $0x18] sm:$0xff] %vm728_vm2, %v715_v40 }
 0x232   :  { %v695_v20 = vpop.xlane.xlu0 %694 }
 0x233   :  { %v723_v29 = vadd.f32 %v810_v46, %v695_v20 }
 0x235   :  { %740 = vst.msk [vmem:[%s1338_s7 + $0x58] sm:$0xff] %vm728_vm2, %v723_v29 }
 0x237   :  { %v683_v24 = vpop.xlane.xlu2 %682 }
 0x238   :  { %v719_v41 = vadd.f32 %v810_v46, %v683_v24 }
 0x23a   :  { %736 = vst.msk [vmem:[%s1338_s7 + $0x38] sm:$0xff] %vm728_vm2, %v719_v41  ;;  %v704_v31 = vpop.xlane.xlu0 %703 }
 0x23b   :  { %v726_v8 = vadd.f32 %v810_v46, %v704_v31 }
 0x23d   :  { %743 = vst.msk [vmem:[%s1338_s7 + $0x70] sm:$0xff] %vm728_vm2, %v726_v8 }
 0x23f   :  { %v701_v56 = vpop.xlane.xlu2 %700 }
 0x240   :  { %v725_v45 = vadd.f32 %v810_v46, %v701_v56 }
 0x242   :  { %742 = vst.msk [vmem:[%s1338_s7 + $0x68] sm:$0xff] %vm728_vm2, %v725_v45 }

</bundles_post_ra>
